<compile_context>
chip_gen: v6e
topology: v6e:2x2x1
jax: 0.10.0
libtpu: 0.0.40
codegen_flags: <defaults>
</compile_context>

<pallas_src>
import functools

import jax
import jax.numpy as jnp
from jax.experimental import pallas as pl
from jax.experimental.pallas import tpu as pltpu


# ----------------------------- tiling helpers ------------------------------

def _pick_tile(dim, target, floor):
    """Largest tile <= target (halving) that divides `dim`; else the full dim.

    Keeps blocks either full-extent or (8,128)-aligned, so the same code runs
    at toy shapes (full blocks) and real shapes (proper tiles).
    """
    t = min(target, dim)
    while t >= floor:
        if dim % t == 0:
            return t
        t //= 2
    return dim


# ----------------------- LayerNorm row statistics ---------------------------

def _row_stats_kernel(x_ref, mean_ref, rstd_ref, *, eps):
    x = x_ref[...].astype(jnp.float32)
    mean = jnp.mean(x, axis=-1, keepdims=True)
    var = jnp.mean(jnp.square(x - mean), axis=-1, keepdims=True)
    mean_ref[...] = mean
    rstd_ref[...] = jax.lax.rsqrt(var + eps)


def layernorm_row_stats(x, eps=1e-5):
    """x: [M, K] -> (mean [M,1], rstd [M,1]); LN apply is fused into matmuls."""
    M, K = x.shape
    tm = _pick_tile(M, 256, 8)
    return pl.pallas_call(
        functools.partial(_row_stats_kernel, eps=eps),
        out_shape=(jax.ShapeDtypeStruct((M, 1), jnp.float32),
                   jax.ShapeDtypeStruct((M, 1), jnp.float32)),
        grid=(M // tm,),
        in_specs=[pl.BlockSpec((tm, K), lambda i: (i, 0))],
        out_specs=(pl.BlockSpec((tm, 1), lambda i: (i, 0)),
                   pl.BlockSpec((tm, 1), lambda i: (i, 0))),
        compiler_params=pltpu.CompilerParams(
            dimension_semantics=("parallel",)),
    )(x)


# ------------------------- fused (LN) + linear (+epilogue) -------------------

def _fused_linear_kernel(*refs, has_ln, has_res, activation):
    it = iter(refs)
    x_ref = next(it)
    if has_ln:
        mean_ref = next(it)
        rstd_ref = next(it)
        g_ref = next(it)
        beta_ref = next(it)
    w_ref = next(it)
    b_ref = next(it)
    res_ref = next(it) if has_res else None
    o_ref = next(it)
    acc_ref = next(it)

    k = pl.program_id(2)

    @pl.when(k == 0)
    def _():
        acc_ref[...] = jnp.zeros_like(acc_ref)

    x = x_ref[...].astype(jnp.float32)
    if has_ln:
        x = (x - mean_ref[...]) * rstd_ref[...] * g_ref[...] + beta_ref[...]

    acc_ref[...] += jnp.dot(x.astype(jnp.bfloat16),
                            w_ref[...].astype(jnp.bfloat16),
                            preferred_element_type=jnp.float32)

    @pl.when(k == pl.num_programs(2) - 1)
    def _():
        y = acc_ref[...] + b_ref[...]
        if activation == "gelu":
            y = jax.nn.gelu(y)
        if has_res:
            y = y + res_ref[...].astype(jnp.float32)
        o_ref[...] = y.astype(o_ref.dtype)


def fused_linear(x, w, b, *, ln=None, ln_stats=None, residual=None,
                 activation=None, tm_target=256, tn_target=256, tk_target=512):
    """y = epilogue( LN?(x) @ w + b ), tiled over (M, N, K) with fp32 acc.

    x: [M, K]; w: [K, N]; b: [N]; ln = (gamma, beta); residual: [M, N].
    """
    M, K = x.shape
    N = w.shape[1]
    tm = _pick_tile(M, tm_target, 8)
    tn = _pick_tile(N, tn_target, 128)
    tk = _pick_tile(K, tk_target, 128)
    has_ln = ln is not None
    has_res = residual is not None

    inputs = [x]
    in_specs = [pl.BlockSpec((tm, tk), lambda i, j, k: (i, k))]
    if has_ln:
        gamma, beta = ln
        if ln_stats is None:
            ln_stats = layernorm_row_stats(x)
        mean, rstd = ln_stats
        inputs += [mean, rstd, gamma.reshape(1, K), beta.reshape(1, K)]
        in_specs += [pl.BlockSpec((tm, 1), lambda i, j, k: (i, 0)),
                     pl.BlockSpec((tm, 1), lambda i, j, k: (i, 0)),
                     pl.BlockSpec((1, tk), lambda i, j, k: (0, k)),
                     pl.BlockSpec((1, tk), lambda i, j, k: (0, k))]
    inputs += [w, b.reshape(1, N)]
    in_specs += [pl.BlockSpec((tk, tn), lambda i, j, k: (k, j)),
                 pl.BlockSpec((1, tn), lambda i, j, k: (0, j))]
    if has_res:
        inputs.append(residual)
        in_specs.append(pl.BlockSpec((tm, tn), lambda i, j, k: (i, j)))

    kernel = functools.partial(_fused_linear_kernel, has_ln=has_ln,
                               has_res=has_res, activation=activation)
    return pl.pallas_call(
        kernel,
        out_shape=jax.ShapeDtypeStruct((M, N), x.dtype),
        grid=(M // tm, N // tn, K // tk),
        in_specs=in_specs,
        out_specs=pl.BlockSpec((tm, tn), lambda i, j, k: (i, j)),
        scratch_shapes=[pltpu.VMEM((tm, tn), jnp.float32)],
        compiler_params=pltpu.CompilerParams(
            dimension_semantics=("parallel", "parallel", "arbitrary")),
    )(*inputs)


# --------------------------- flash-style attention ---------------------------

def _flash_attn_kernel(q_ref, k_ref, v_ref, mask_ref, o_ref,
                       m_scr, l_scr, acc_scr,
                       *, n_head, d_head, tq, tkv, scale):
    ki = pl.program_id(2)

    @pl.when(ki == 0)
    def _():
        m_scr[...] = jnp.full_like(m_scr, -1e30)
        l_scr[...] = jnp.zeros_like(l_scr)
        acc_scr[...] = jnp.zeros_like(acc_scr)

    # Causal + padding mask built in-kernel from the [B, S] attention mask.
    qi = pl.program_id(1)
    row = qi * tq + jax.lax.broadcasted_iota(jnp.int32, (tq, tkv), 0)
    col = ki * tkv + jax.lax.broadcasted_iota(jnp.int32, (tq, tkv), 1)
    keym = mask_ref[0]                                  # (1, tkv) int32
    allowed = (col <= row) & (keym != 0)
    bias = jnp.where(allowed, 0.0, -1e30).astype(jnp.float32)

    for h in range(n_head):
        lo, hi = h * d_head, (h + 1) * d_head
        q = q_ref[0, :, lo:hi].astype(jnp.bfloat16)     # (tq, Dh)
        k = k_ref[0, :, lo:hi].astype(jnp.bfloat16)     # (tkv, Dh)
        v = v_ref[0, :, lo:hi].astype(jnp.bfloat16)     # (tkv, Dh)

        s = jax.lax.dot_general(q, k, (((1,), (1,)), ((), ())),
                                preferred_element_type=jnp.float32)
        s = s * scale + bias                            # (tq, tkv)

        m_prev = m_scr[h]                               # (tq, 1)
        m_new = jnp.maximum(m_prev, jnp.max(s, axis=-1, keepdims=True))
        alpha = jnp.exp(m_prev - m_new)
        p = jnp.exp(s - m_new)
        l_scr[h] = alpha * l_scr[h] + jnp.sum(p, axis=-1, keepdims=True)
        acc_scr[h] = alpha * acc_scr[h] + jax.lax.dot_general(
            p.astype(jnp.bfloat16), v, (((1,), (0,)), ((), ())),
            preferred_element_type=jnp.float32)
        m_scr[h] = m_new

    @pl.when(ki == pl.num_programs(2) - 1)
    def _():
        for h in range(n_head):
            inv = pl.reciprocal(l_scr[h], approx=True)
            o_ref[0, :, h * d_head:(h + 1) * d_head] = (
                acc_scr[h] * inv).astype(o_ref.dtype)


def flash_attention(q, k, v, attn_mask, *, n_head):
    """q,k,v: [B, S, H] (heads packed along the lane dim); attn_mask: [B, S].

    Output: [B, S, H] in the same packed-head layout (no XLA transposes).
    """
    B, S, H = q.shape
    d_head = H // n_head
    scale = 1.0 / float(d_head) ** 0.5
    tq = _pick_tile(S, 256, 8)
    tkv = _pick_tile(S, 256, 8)
    mask3 = attn_mask.astype(jnp.int32).reshape(B, 1, S)

    kernel = functools.partial(_flash_attn_kernel, n_head=n_head,
                               d_head=d_head, tq=tq, tkv=tkv, scale=scale)
    q_spec = pl.BlockSpec((1, tq, H), lambda b, qi, ki: (b, qi, 0))
    kv_spec = pl.BlockSpec((1, tkv, H), lambda b, qi, ki: (b, ki, 0))
    return pl.pallas_call(
        kernel,
        out_shape=jax.ShapeDtypeStruct((B, S, H), q.dtype),
        grid=(B, S // tq, S // tkv),
        in_specs=[q_spec, kv_spec, kv_spec,
                  pl.BlockSpec((1, 1, tkv), lambda b, qi, ki: (b, 0, ki))],
        out_specs=pl.BlockSpec((1, tq, H), lambda b, qi, ki: (b, qi, 0)),
        scratch_shapes=[pltpu.VMEM((n_head, tq, 1), jnp.float32),
                        pltpu.VMEM((n_head, tq, 1), jnp.float32),
                        pltpu.VMEM((n_head, tq, d_head), jnp.float32)],
        compiler_params=pltpu.CompilerParams(
            dimension_semantics=("parallel", "parallel", "arbitrary")),
    )(q, k, v, mask3)


# ------------------------ tiled cross-entropy (ignore=-100) ------------------

def _cross_entropy_kernel(logits_ref, labels_ref, loss_ref, cnt_ref,
                          m_scr, l_scr, p_scr, *, tv):
    ri = pl.program_id(0)
    vj = pl.program_id(1)

    @pl.when((ri == 0) & (vj == 0))
    def _():
        loss_ref[...] = jnp.zeros_like(loss_ref)
        cnt_ref[...] = jnp.zeros_like(cnt_ref)

    @pl.when(vj == 0)
    def _():
        m_scr[...] = jnp.full_like(m_scr, -1e30)
        l_scr[...] = jnp.zeros_like(l_scr)
        p_scr[...] = jnp.zeros_like(p_scr)

    logits = logits_ref[...].astype(jnp.float32)        # (tr, tv)
    labels = labels_ref[...]                            # (tr, 1) int32

    col = vj * tv + jax.lax.broadcasted_iota(jnp.int32, logits.shape, 1)
    onehot = (col == labels).astype(jnp.float32)        # -100 never matches
    p_scr[...] += jnp.sum(logits * onehot, axis=-1, keepdims=True)

    m_prev = m_scr[...]
    m_new = jnp.maximum(m_prev, jnp.max(logits, axis=-1, keepdims=True))
    l_scr[...] = l_scr[...] * jnp.exp(m_prev - m_new) + jnp.sum(
        jnp.exp(logits - m_new), axis=-1, keepdims=True)
    m_scr[...] = m_new

    @pl.when(vj == pl.num_programs(1) - 1)
    def _():
        lse = m_scr[...] + jnp.log(l_scr[...])
        valid = (labels != -100).astype(jnp.float32)
        nll = (lse - p_scr[...]) * valid
        loss_ref[...] += jnp.sum(nll).reshape(1, 1)
        cnt_ref[...] += jnp.sum(valid).reshape(1, 1)


def cross_entropy_mean(logits, labels):
    """logits: [N, V], labels: [N] int32 with ignore_index=-100 -> mean loss."""
    N, V = logits.shape
    tr = _pick_tile(N, 256, 8)
    tv = _pick_tile(V, 2048, 128)
    kernel = functools.partial(_cross_entropy_kernel, tv=tv)
    loss_sum, cnt = pl.pallas_call(
        kernel,
        out_shape=(jax.ShapeDtypeStruct((1, 1), jnp.float32),
                   jax.ShapeDtypeStruct((1, 1), jnp.float32)),
        grid=(N // tr, V // tv),
        in_specs=[pl.BlockSpec((tr, tv), lambda ri, vj: (ri, vj)),
                  pl.BlockSpec((tr, 1), lambda ri, vj: (ri, 0))],
        out_specs=(pl.BlockSpec((1, 1), lambda ri, vj: (0, 0)),
                   pl.BlockSpec((1, 1), lambda ri, vj: (0, 0))),
        scratch_shapes=[pltpu.VMEM((tr, 1), jnp.float32),
                        pltpu.VMEM((tr, 1), jnp.float32),
                        pltpu.VMEM((tr, 1), jnp.float32)],
        compiler_params=pltpu.CompilerParams(
            dimension_semantics=("arbitrary", "arbitrary")),
    )(logits, labels.reshape(N, 1).astype(jnp.int32))
    return loss_sum[0, 0] / jnp.maximum(cnt[0, 0], 1.0)


# ------------------------------ model (glue) --------------------------------

def init_params(key, *, vocab, seq, hidden, n_head, mlp):
    ks = jax.random.split(key, 9)
    std = 0.02
    f32 = jnp.float32
    return {
        "tok_emb": jax.random.normal(ks[0], (vocab, hidden), f32) * std,
        "pos_emb": jax.random.normal(ks[1], (seq, hidden), f32) * std,
        "ln1_g": jnp.ones((hidden,), f32), "ln1_b": jnp.zeros((hidden,), f32),
        "w_q": jax.random.normal(ks[2], (hidden, hidden), f32) * std,
        "b_q": jnp.zeros((hidden,), f32),
        "w_k": jax.random.normal(ks[3], (hidden, hidden), f32) * std,
        "b_k": jnp.zeros((hidden,), f32),
        "w_v": jax.random.normal(ks[4], (hidden, hidden), f32) * std,
        "b_v": jnp.zeros((hidden,), f32),
        "w_proj": jax.random.normal(ks[5], (hidden, hidden), f32) * std,
        "b_proj": jnp.zeros((hidden,), f32),
        "ln2_g": jnp.ones((hidden,), f32), "ln2_b": jnp.zeros((hidden,), f32),
        "w_fc": jax.random.normal(ks[6], (hidden, mlp), f32) * std,
        "b_fc": jnp.zeros((mlp,), f32),
        "w_out": jax.random.normal(ks[7], (mlp, hidden), f32) * std,
        "b_out": jnp.zeros((hidden,), f32),
        "lnf_g": jnp.ones((hidden,), f32), "lnf_b": jnp.zeros((hidden,), f32),
        "w_lm": jax.random.normal(ks[8], (hidden, vocab), f32) * std,
        "b_lm": jnp.zeros((vocab,), f32),
        "n_head": n_head,
    }


def answer_generation_forward(params, p_input_ids, p_attention_mask, label_ids):
    """Equivalent of AnswerGenerationModel.forward: delegates to the LM and
    returns its outputs (loss + logits)."""
    B, S = p_input_ids.shape
    H = params["tok_emb"].shape[1]
    nH = params["n_head"]

    # Embeddings (gather stays in XLA glue).
    x = jnp.take(params["tok_emb"], p_input_ids, axis=0) + params["pos_emb"][None]
    x2d = x.reshape(B * S, H)

    # --- self-attention block (pre-LN), LN fused into the Q/K/V projections --
    ln1 = (params["ln1_g"], params["ln1_b"])
    stats1 = layernorm_row_stats(x2d)
    q2d = fused_linear(x2d, params["w_q"], params["b_q"], ln=ln1, ln_stats=stats1)
    k2d = fused_linear(x2d, params["w_k"], params["b_k"], ln=ln1, ln_stats=stats1)
    v2d = fused_linear(x2d, params["w_v"], params["b_v"], ln=ln1, ln_stats=stats1)

    a = flash_attention(q2d.reshape(B, S, H), k2d.reshape(B, S, H),
                        v2d.reshape(B, S, H), p_attention_mask, n_head=nH)
    # output projection with the residual add fused into its epilogue
    x2d = fused_linear(a.reshape(B * S, H), params["w_proj"], params["b_proj"],
                       residual=x2d)

    # --- MLP block (pre-LN), LN + GELU fused; residual fused into w_out ------
    h = fused_linear(x2d, params["w_fc"], params["b_fc"],
                     ln=(params["ln2_g"], params["ln2_b"]), activation="gelu")
    x2d = fused_linear(h, params["w_out"], params["b_out"], residual=x2d)

    # --- LM head with the final LN fused ------------------------------------
    logits2d = fused_linear(x2d, params["w_lm"], params["b_lm"],
                            ln=(params["lnf_g"], params["lnf_b"]))
    logits = logits2d.reshape(B, S, -1)

    # HF-style causal-LM loss: fold the shift into the labels so the logits
    # are never sliced/copied; ignore_index = -100 (last position ignored).
    shifted_labels = jnp.concatenate(
        [label_ids[:, 1:], jnp.full((B, 1), -100, label_ids.dtype)], axis=1)
    loss = cross_entropy_mean(logits2d, shifted_labels.reshape(B * S))
    return {"loss": loss, "logits": logits}


# --------------------------------- main -------------------------------------

if __name__ == "__main__":
    B, S, H, NH, V, MLP = 2, 8, 32, 2, 64, 64

    key = jax.random.PRNGKey(0)
    k_param, k_ids, k_lbl = jax.random.split(key, 3)

    params = init_params(k_param, vocab=V, seq=S, hidden=H, n_head=NH, mlp=MLP)

    p_input_ids = jax.random.randint(k_ids, (B, S), 0, V, dtype=jnp.int32)
    p_attention_mask = jnp.ones((B, S), jnp.int32).at[1, -2:].set(0)  # pad tail of row 1
    label_ids = jax.random.randint(k_lbl, (B, S), 0, V, dtype=jnp.int32)
    label_ids = label_ids.at[1, -2:].set(-100)                        # ignored positions

    outputs = answer_generation_forward(params, p_input_ids, p_attention_mask, label_ids)
    jax.block_until_ready(outputs)

    assert outputs["logits"].shape == (B, S, V)
    assert outputs["loss"].shape == ()
    assert bool(jnp.isfinite(outputs["loss"]))
    print("KERNEL_OK")
</pallas_src>

<mosaic_0001>
module attributes {stable_mosaic.version = 11 : i64} {
  func.func @_row_stats_kernel(%arg0: i32, %arg1: memref<16x32xf32, #tpu.memory_space<vmem>>, %arg2: memref<16x1xf32, #tpu.memory_space<vmem>>, %arg3: memref<16x1xf32, #tpu.memory_space<vmem>>) attributes {dimension_semantics = [#tpu.dimension_semantics<parallel>], iteration_bounds = array<i64: 1>, scalar_prefetch = 0 : i64, scratch_operands = 0 : i64, tpu.core_type = #tpu.core_type<tc>, window_params = [{transform_indices = @transform_0, window_bounds = array<i64: 16, 32>}, {transform_indices = @transform_1, window_bounds = array<i64: 16, 1>}, {transform_indices = @transform_2, window_bounds = array<i64: 16, 1>}]} {
    %c0 = arith.constant 0 : index
    %c0_0 = arith.constant 0 : index
    %0 = vector.load %arg1[%c0, %c0_0] : memref<16x32xf32, #tpu.memory_space<vmem>>, vector<16x32xf32>
    %cst = arith.constant dense<0.000000e+00> : vector<16xf32>
    %1 = vector.multi_reduction <add>, %0, %cst [1] : vector<16x32xf32> to vector<16xf32>
    %2 = vector.shape_cast %1 : vector<16xf32> to vector<16x1xf32>
    %cst_1 = arith.constant 3.200000e+01 : f32
    %3 = vector.broadcast %cst_1 : f32 to vector<16x1xf32>
    %4 = arith.divf %2, %3 : vector<16x1xf32>
    %5 = vector.broadcast %4 : vector<16x1xf32> to vector<16x32xf32>
    %6 = arith.subf %0, %5 : vector<16x32xf32>
    %7 = arith.mulf %6, %6 : vector<16x32xf32>
    %cst_2 = arith.constant dense<0.000000e+00> : vector<16xf32>
    %8 = vector.multi_reduction <add>, %7, %cst_2 [1] : vector<16x32xf32> to vector<16xf32>
    %9 = vector.shape_cast %8 : vector<16xf32> to vector<16x1xf32>
    %cst_3 = arith.constant 3.200000e+01 : f32
    %10 = vector.broadcast %cst_3 : f32 to vector<16x1xf32>
    %11 = arith.divf %9, %10 : vector<16x1xf32>
    %c0_4 = arith.constant 0 : index
    %c0_5 = arith.constant 0 : index
    %12 = vector.load %arg2[%c0_4, %c0_5] : memref<16x1xf32, #tpu.memory_space<vmem>>, vector<16x1xf32>
    tpu.vector_store %arg2[%c0_4, %c0_5], %4 {strides = array<i32>} : memref<16x1xf32, #tpu.memory_space<vmem>>, vector<16x1xf32>,
    %cst_6 = arith.constant 9.99999974E-6 : f32
    %13 = vector.broadcast %cst_6 : f32 to vector<16x1xf32>
    %14 = arith.addf %11, %13 : vector<16x1xf32>
    %15 = math.rsqrt %14 : vector<16x1xf32>
    %c0_7 = arith.constant 0 : index
    %c0_8 = arith.constant 0 : index
    %16 = vector.load %arg3[%c0_7, %c0_8] : memref<16x1xf32, #tpu.memory_space<vmem>>, vector<16x1xf32>
    tpu.vector_store %arg3[%c0_7, %c0_8], %15 {strides = array<i32>} : memref<16x1xf32, #tpu.memory_space<vmem>>, vector<16x1xf32>,
    return
  }
  func.func @transform_0(%arg0: i32) -> (i32, i32) {
    %c0_i32 = arith.constant 0 : i32
    %c0_i32_0 = arith.constant 0 : i32
    return %arg0, %c0_i32 : i32, i32
  }
  func.func @transform_1(%arg0: i32) -> (i32, i32) {
    %c0_i32 = arith.constant 0 : i32
    %c0_i32_0 = arith.constant 0 : i32
    return %arg0, %c0_i32 : i32, i32
  }
  func.func @transform_2(%arg0: i32) -> (i32, i32) {
    %c0_i32 = arith.constant 0 : i32
    %c0_i32_0 = arith.constant 0 : i32
    return %arg0, %c0_i32 : i32, i32
  }
}

</mosaic_0001>

<bundles_post_ra>
// kernel: tpu_custom_call.1
= control target key start
LH: loop header
LB: loop body
LE: loop exit
PB: predicated region body
PF: predicated region fallthrough
CT: control target
= control target key end

     0   :  { %8 = vsyncpa [#allocation3], 0  ;;  %s95_s9 = smov [#allocation2]   ;;  %s136_s0 = inlined_call_operand.hbm [shape: f32[16,32], index: 0, kind: input, shape index: {}]   ;;  %s137_s1 = inlined_call_operand.vmem [shape: f32[16,1], index: 1, kind: output, shape index: {0}]   ;;  %s138_s2 = inlined_call_operand.vmem [shape: f32[16,1], index: 2, kind: output, shape index: {1}]  }
   0x1   :  { %s14_s10 = sshll.u32 %s95_s9, 4  ;;  %s15_s10 = int_to_ptr.vmem [resolvable:$true] %s14_s10 }
   0x2   :  { %s81_s11 = scalar_lea.vmem %s15_s10, 256  ;;  %p86_p1 = scmp.lt.s32.totalorder %s15_s10, %s15_s10 }
   0x3   :  { %p82_p0 = scmp.ne.s32.totalorder %s15_s10, %s81_s11  ;;  %p87_p2 = scmp.lt.s32.totalorder %s81_s11, %s81_s11 }
   0x5   :  { %p88_p3 = por %p87_p2, %p86_p1 }
   0x7   :  { %p89_p4 = pnand %p88_p3, %p82_p0 }
   0x9   :  { %92 = shalt.err (!%p89_p4)
}
   0xa   :  { %s96_s12 = smov 128   ;;  %s97_s13 = smov 8  }
   0xb   :  { %20 = dma.hbm_to_vmem [thread:$0]  %s136_s0, 256, %s15_s10, [#allocation3], %s96_s12, %s96_s12, %s97_s13  }
   0xc   :  { %93 = dma.done.wait [#allocation3], 256  }
   0xd   :  { %94 = vsyncadd [#allocation3], 4294967040  ;;  %vm26_vm0 = vcmask 261120   ;;  %v24_v0 = vld [vmem:[#allocation2] sm:$0xff]  ;;  %v25_v1 = vld [vmem:[#allocation2 + $0x8] sm:$0xff]  ;;  %vm48_vm1 = vcmask 7168  }
   0xe   :  { %v27_v2 = vsel %vm26_vm0, %v24_v0, 0.0  ;;  %v30_v3 = vsel %vm26_vm0, %v25_v1, 0.0 }
   0xf   :  { %28 = vadd.xlane.f32.xlu0 %v27_v2 }
  0x13   :  { %31 = vadd.xlane.f32.xlu0 %v30_v3 }
  0x98   :  { %v29_v4 = vpop.xlane.xlu0 %28 }
  0x99   :  { %v34_v5 = vmul.f32 0.03125, %v29_v4 }
  0x9b   :  { %49 = vst.msk [vmem:[%s137_s1] sm:$0xff] %vm48_vm1, %v34_v5  ;;  %v36_v6 = vsub.f32 %v24_v0, %v34_v5 }
  0x9c   :  { %v32_v7 = vpop.xlane.xlu0 %31 }
  0x9d   :  { %v35_v8 = vmul.f32 0.03125, %v32_v7  ;;  %v38_v9 = vmul.f32 %v36_v6, %v36_v6 }
  0x9f   :  { %v37_v10 = vsub.f32 %v25_v1, %v35_v8  ;;  %50 = vst.msk [vmem:[%s137_s1 + $0x8] sm:$0xff] %vm48_vm1, %v35_v8  ;;  %v40_v11 = vsel %vm26_vm0, %v38_v9, 0.0 }
  0xa0   :  { %41 = vadd.xlane.f32.xlu1 %v40_v11 }
  0xa1   :  { %v39_v12 = vmul.f32 %v37_v10, %v37_v10 }
  0xa3   :  { %v43_v13 = vsel %vm26_vm0, %v39_v12, 0.0 }
  0xa4   :  { %44 = vadd.xlane.f32.xlu1 %v43_v13 }
 0x129   :  { %v42_v14 = vpop.xlane.xlu1 %41 }
 0x12a   :  { %v46_v15 = vmul.f32 0.03125, %v42_v14 }
 0x12c   :  { %v51_v16 = vadd.f32 1e-05, %v46_v15 }
 0x12d   :  { %v45_v17 = vpop.xlane.xlu1 %44 }
 0x12e   :  { %69 = vrsqrt.f32 %v51_v16  ;;  %v47_v18 = vmul.f32 0.03125, %v45_v17 }
 0x130   :  { %v52_v19 = vadd.f32 1e-05, %v47_v18 }
 0x132   :  { %71 = vrsqrt.f32 %v52_v19 }
 0x13b   :  { %v70_v20 = vpop.eup %69 }
 0x13c   :  { %55 = vst.msk [vmem:[%s138_s2] sm:$0xff] %vm48_vm1, %v70_v20 }
 0x13f   :  { %v72_v21 = vpop.eup %71 }
 0x140   :  { %56 = vst.msk [vmem:[%s138_s2 + $0x8] sm:$0xff] %vm48_vm1, %v72_v21 }
 0x141   :  { %65 = vsyncpa [#allocation3], 1 }

</bundles_post_ra>
